<compile_context>
chip_gen: v7x
topology: tpu7x:2x2x1
jax: 0.10.0
libtpu: 0.0.40
codegen_flags: <defaults>
</compile_context>

<pallas_src>
import functools

import jax
import jax.numpy as jnp
from jax import lax
from jax.experimental import pallas as pl
from jax.experimental.pallas import tpu as pltpu


def _nms_kernel(coords_ref, rows_hbm, det_ref,
                score_scr, row_scr, cnt_smem, row_sem, *,
                score_threshold, iou_threshold, max_detection):
    R = coords_ref.shape[1] // 6          # anchor axis folded to (R, 128)
    b = pl.program_id(0)

    # score-threshold filter (torch: boolean-mask compaction) -> -inf sentinel
    scores = coords_ref[0, 4 * R:5 * R, :]
    score_scr[...] = jnp.where(scores >= score_threshold, scores, -jnp.inf)
    det_ref[...] = jnp.zeros_like(det_ref)
    cnt_smem[0] = 0

    @pl.loop(0, max_detection)
    def _(i):
        # Early exit: cnt == i iff every previous iteration picked a box.
        @pl.when(cnt_smem[0] == i)
        def _():
            ws = score_scr[...]                                    # (R, 128)
            # fused max/argmax: one full-plane lane reduce, then tiny reduces
            row_max = jnp.max(ws, axis=1, keepdims=True)           # (R, 1)
            best_v = jnp.max(row_max, axis=0, keepdims=True)       # (1, 1)
            best = jnp.max(row_max)                                # scalar gate

            @pl.when(best >= score_threshold)                      # candidates left?
            def _():
                row_ids = lax.broadcasted_iota(jnp.int32, (R, 1), 0)
                lane_ids = lax.broadcasted_iota(jnp.int32, (1, 128), 1)

                # first (row, lane) attaining the max -> torch argmax semantics
                best_row = jnp.min(jnp.where(row_max == best_v, row_ids, R))
                ws_row = score_scr[pl.ds(best_row, 1), :]          # (1, 128)
                best_lane = jnp.min(jnp.where(ws_row == best_v, lane_ids, 128))
                best_idx = best_row * 128 + best_lane

                # O(1) row gather from HBM, started early so it overlaps the
                # (R,128) IoU / suppression work below.
                row_cp = pltpu.make_async_copy(
                    rows_hbm.at[b, pl.ds(best_idx, 1), :], row_scr, row_sem)
                row_cp.start()

                # winner coords as (1,1) keepdims vregs (no vreg->sreg->vreg)
                lane_sel = lane_ids == best_lane                   # (1, 128)

                def pick_plane(p):
                    r = coords_ref[0, pl.ds(p * R + best_row, 1), :]   # (1,128)
                    return jnp.sum(jnp.where(lane_sel, r, 0.0),
                                   axis=1, keepdims=True)               # (1,1)

                bx1 = pick_plane(0)
                by1 = pick_plane(1)
                bx2 = pick_plane(2)
                by2 = pick_plane(3)
                barea = pick_plane(5)

                # planes are read inside the body (not hoisted) to keep vreg
                # pressure low at large anchor counts.
                x1 = coords_ref[0, 0 * R:1 * R, :]
                y1 = coords_ref[0, 1 * R:2 * R, :]
                x2 = coords_ref[0, 2 * R:3 * R, :]
                y2 = coords_ref[0, 3 * R:4 * R, :]
                area = coords_ref[0, 5 * R:6 * R, :]

                # broadcast IoU of winner vs all candidates (division-free)
                ix1 = jnp.maximum(x1, bx1)
                iy1 = jnp.maximum(y1, by1)
                ix2 = jnp.minimum(x2, bx2)
                iy2 = jnp.minimum(y2, by2)
                inter = (jnp.maximum(ix2 - ix1, 0.0) *
                         jnp.maximum(iy2 - iy1, 0.0))
                union = area + barea - inter
                # inter > thr*union  <=>  inter/union > thr  (union >= 0)
                # TODO(synk): degenerate zero-area pairs (union == 0) are kept
                # here; torch's NaN IoU compare drops them.
                self_mask = (row_ids == best_row) & (lane_ids == best_lane)
                suppress = (inter > iou_threshold * union) | self_mask
                score_scr[...] = jnp.where(suppress, -jnp.inf, ws)

                cnt_smem[0] = i + 1

                # land the picked row; single lane-dense dynamic-row store.
                row_cp.wait()
                det_ref[0, pl.ds(i, 1), :] = row_scr[...]

    # row `max_detection` carries the valid count (torch `fill_(count)` row)
    det_ref[0, max_detection:max_detection + 1, :] = jnp.full(
        (1, det_ref.shape[2]), cnt_smem[0].astype(jnp.float32))


class Postprocessor:
    def __init__(self, iou_threshold=0.5, score_threshold=0.5, max_detection=100):
        self.iou_threshold = float(iou_threshold)
        self.score_threshold = float(score_threshold)
        self.max_detection = int(max_detection)

    def __call__(self, raw_yolo_outputs):
        # --- glue: reshape / concat the multi-scale YOLO heads (plain JAX) ---
        boxes, objectness, landmarks = [], [], []
        for raw in raw_yolo_outputs:
            b = raw[0].shape[0]
            nl = raw[2].shape[-1]
            boxes.append(raw[0].reshape(b, -1, 4))
            objectness.append(raw[1].reshape(b, -1, 1))
            landmarks.append(raw[2].reshape(b, -1, nl))
        boxes = jnp.concatenate(boxes, axis=1).astype(jnp.float32)
        obj = jnp.concatenate(objectness, axis=1).astype(jnp.float32)
        lmk = jnp.concatenate(landmarks, axis=1).astype(jnp.float32)

        # xywh -> corners, done once in the wrapper (matches torch which
        # converts before NMS).
        # TODO(synk): torch helper `xywh_to_x1x2y1y2` is external; standard
        # center-size -> (x1, y1, x2, y2) column order is assumed.
        cx, cy, w, h = jnp.split(boxes, 4, axis=-1)
        boxes_xyxy = jnp.concatenate(
            [cx - 0.5 * w, cy - 0.5 * h, cx + 0.5 * w, cy + 0.5 * h], axis=-1)

        combined = jnp.concatenate([boxes_xyxy, obj, lmk], axis=2)   # (B, N, F)
        B, N, F = combined.shape

        # anchor axis padded to a multiple of 1024 -> R multiple of 8 (aligned
        # plane slices); feature axis padded to a lane multiple (lane-dense
        # stores / contiguous per-pick row DMAs).
        n_pad = ((N + 1023) // 1024) * 1024
        R = n_pad // 128
        f_pad = ((F + 127) // 128) * 128

        comb_rows = jnp.zeros((B, n_pad, f_pad), jnp.float32)
        comb_rows = comb_rows.at[:, :, 4].set(-1e30)      # padded-anchor score
        comb_rows = comb_rows.at[:, :N, :F].set(combined)  # (B, n_pad, f_pad)

        # sublane-dense per-anchor planes: x1, y1, x2, y2, score, area
        x1 = comb_rows[:, :, 0]
        y1 = comb_rows[:, :, 1]
        x2 = comb_rows[:, :, 2]
        y2 = comb_rows[:, :, 3]
        sc = comb_rows[:, :, 4]
        area = jnp.maximum(x2 - x1, 0.0) * jnp.maximum(y2 - y1, 0.0)
        coords_dense = jnp.stack([x1, y1, x2, y2, sc, area], axis=1)  # (B,6,n_pad)
        coords_dense = coords_dense.reshape(B, 6 * R, 128)

        md = self.max_detection
        kernel = functools.partial(
            _nms_kernel,
            score_threshold=self.score_threshold,
            iou_threshold=self.iou_threshold,
            max_detection=md)

        det = pl.pallas_call(
            kernel,
            grid=(B,),
            in_specs=[pl.BlockSpec((1, 6 * R, 128), lambda b: (b, 0, 0)),
                      pl.BlockSpec(memory_space=pl.ANY)],   # rows stay in HBM
            out_specs=pl.BlockSpec((1, md + 1, f_pad), lambda b: (b, 0, 0)),
            out_shape=jax.ShapeDtypeStruct((B, md + 1, f_pad), jnp.float32),
            scratch_shapes=[pltpu.VMEM((R, 128), jnp.float32),    # working scores
                            pltpu.VMEM((1, f_pad), jnp.float32),  # picked row
                            pltpu.SMEM((1,), jnp.int32),          # valid count
                            pltpu.SemaphoreType.DMA(())],         # row-DMA sem
            compiler_params=pltpu.CompilerParams(
                # each batch writes a disjoint output block -> megacore-safe
                dimension_semantics=("parallel",)),
        )(coords_dense, comb_rows)

        final = det[:, :md, :F]
        valid_count = det[:, md, 0:1].astype(jnp.int32)           # (B, 1)
        nms_boxes = final[..., 0:4]
        nms_scores = final[..., 4:5]
        nms_landmarks = final[..., 5:]
        return nms_boxes, nms_scores, nms_landmarks, valid_count


if __name__ == "__main__":
    key = jax.random.PRNGKey(0)
    B, A, L = 2, 3, 10                      # batch, anchors per cell, landmarks

    # two YOLO scales: (boxes_xywh, objectness, landmarks) per scale
    raw_outputs = []
    for grid_hw in (4, 2):
        key, k1, k2, k3 = jax.random.split(key, 4)
        box = jax.random.uniform(k1, (B, A, grid_hw, grid_hw, 4), jnp.float32)
        objn = jax.random.uniform(k2, (B, A, grid_hw, grid_hw, 1), jnp.float32)
        lmk = jax.random.uniform(k3, (B, A, grid_hw, grid_hw, L), jnp.float32)
        raw_outputs.append((box, objn, lmk))

    post = Postprocessor(iou_threshold=0.5, score_threshold=0.5, max_detection=100)
    nms_boxes, nms_scores, nms_landmarks, valid_count = post(raw_outputs)
    jax.block_until_ready((nms_boxes, nms_scores, nms_landmarks, valid_count))

    assert nms_boxes.shape == (B, 100, 4)
    assert nms_scores.shape == (B, 100, 1)
    assert nms_landmarks.shape == (B, 100, L)
    assert valid_count.shape == (B, 1) and valid_count.dtype == jnp.int32
    print("KERNEL_OK")
</pallas_src>

<mosaic_0001>
module attributes {stable_mosaic.version = 11 : i64} {
  func.func @_nms_kernel(%arg0: i32, %arg1: memref<1x48x128xf32, #tpu.memory_space<vmem>>, %arg2: memref<2x1024x128xf32, #tpu.memory_space<any>>, %arg3: memref<1x101x128xf32, #tpu.memory_space<vmem>>, %arg4: memref<8x128xf32, #tpu.memory_space<vmem>>, %arg5: memref<1x128xf32, #tpu.memory_space<vmem>>, %arg6: memref<1xi32, #tpu.memory_space<smem>>, %arg7: memref<!tpu.dma_semaphore, #tpu.memory_space<semaphore_mem>>) attributes {dimension_semantics = [#tpu.dimension_semantics<parallel>], iteration_bounds = array<i64: 2>, scalar_prefetch = 0 : i64, scratch_operands = 4 : i64, tpu.core_type = #tpu.core_type<tc>, window_params = [{transform_indices = @transform_0, window_bounds = array<i64: 1, 48, 128>}, {}, {transform_indices = @transform_2, window_bounds = array<i64: 1, 101, 128>}]} {
    %c0 = arith.constant 0 : index
    %c32 = arith.constant 32 : index
    %c0_0 = arith.constant 0 : index
    %0 = vector.load %arg1[%c0, %c32, %c0_0] : memref<1x48x128xf32, #tpu.memory_space<vmem>>, vector<1x8x128xf32>
    %1 = vector.shape_cast %0 : vector<1x8x128xf32> to vector<8x128xf32>
    %cst = arith.constant 5.000000e-01 : f32
    %2 = vector.broadcast %cst : f32 to vector<8x128xf32>
    %3 = arith.cmpf oge, %1, %2 : vector<8x128xf32>
    %cst_1 = arith.constant 0xFF800000 : f32
    %4 = vector.broadcast %cst_1 : f32 to vector<8x128xf32>
    %5 = arith.select %3, %1, %4 : vector<8x128xi1>, vector<8x128xf32>
    %c0_2 = arith.constant 0 : index
    %c0_3 = arith.constant 0 : index
    %6 = vector.load %arg4[%c0_2, %c0_3] : memref<8x128xf32, #tpu.memory_space<vmem>>, vector<8x128xf32>
    tpu.vector_store %arg4[%c0_2, %c0_3], %5 {strides = array<i32>} : memref<8x128xf32, #tpu.memory_space<vmem>>, vector<8x128xf32>,
    %cst_4 = arith.constant 0.000000e+00 : f32
    %7 = vector.broadcast %cst_4 : f32 to vector<1x101x128xf32>
    %c0_5 = arith.constant 0 : index
    %c0_6 = arith.constant 0 : index
    %c0_7 = arith.constant 0 : index
    %8 = vector.load %arg3[%c0_5, %c0_6, %c0_7] : memref<1x101x128xf32, #tpu.memory_space<vmem>>, vector<1x101x128xf32>
    tpu.vector_store %arg3[%c0_5, %c0_6, %c0_7], %7 {strides = array<i32>} : memref<1x101x128xf32, #tpu.memory_space<vmem>>, vector<1x101x128xf32>,
    %c0_i32 = arith.constant 0 : i32
    %c0_8 = arith.constant 0 : index
    %9 = memref.load %arg6[%c0_8] : memref<1xi32, #tpu.memory_space<smem>>
    memref.store %c0_i32, %arg6[%c0_8] : memref<1xi32, #tpu.memory_space<smem>>
    %c0_i32_9 = arith.constant 0 : i32
    %c100_i32 = arith.constant 100 : i32
    %10 = arith.addi %c0_i32_9, %c100_i32 : i32
    %c1_i32 = arith.constant 1 : i32
    scf.for %arg8 = %c0_i32_9 to %10 step %c1_i32  : i32 {
      %c1_i32_14 = arith.constant 1 : i32
      %17 = arith.muli %arg8, %c1_i32_14 : i32
      %c0_i32_15 = arith.constant 0 : i32
      %18 = arith.addi %c0_i32_15, %17 : i32
      %c0_16 = arith.constant 0 : index
      %19 = memref.load %arg6[%c0_16] : memref<1xi32, #tpu.memory_space<smem>>
      %20 = arith.cmpi eq, %19, %18 : i32
      %21 = arith.extui %20 : i1 to i32
      %c0_i32_17 = arith.constant 0 : i32
      %22 = arith.cmpi ne, %21, %c0_i32_17 : i32
      scf.if %22 {
        %c0_18 = arith.constant 0 : index
        %c0_19 = arith.constant 0 : index
        %23 = vector.load %arg4[%c0_18, %c0_19] : memref<8x128xf32, #tpu.memory_space<vmem>>, vector<8x128xf32>
        %cst_20 = arith.constant dense<0xFF800000> : vector<8xf32>
        %24 = vector.multi_reduction <maximumf>, %23, %cst_20 [1] : vector<8x128xf32> to vector<8xf32>
        %25 = vector.shape_cast %24 : vector<8xf32> to vector<8x1xf32>
        %cst_21 = arith.constant dense<0xFF800000> : vector<1xf32>
        %26 = vector.multi_reduction <maximumf>, %25, %cst_21 [0] : vector<8x1xf32> to vector<1xf32>
        %27 = vector.shape_cast %26 : vector<1xf32> to vector<1x1xf32>
        %28 = vector.shape_cast %25 : vector<8x1xf32> to vector<1x8x1xf32>
        %cst_22 = arith.constant dense<0xFF800000> : vector<1xf32>
        %29 = vector.multi_reduction <maximumf>, %28, %cst_22 [1, 2] : vector<1x8x1xf32> to vector<1xf32>
        %30 = vector.shape_cast %29 : vector<1xf32> to vector<1x1x1xf32>
        %31 = vector.extract %30[0, 0, 0] : f32 from vector<1x1x1xf32>
        %cst_23 = arith.constant 5.000000e-01 : f32
        %32 = arith.cmpf oge, %31, %cst_23 : f32
        %33 = arith.extui %32 : i1 to i32
        %c0_i32_24 = arith.constant 0 : i32
        %34 = arith.cmpi ne, %33, %c0_i32_24 : i32
        scf.if %34 {
          %35 = tpu.iota {dimensions = array<i32: 0>} : vector<8x1xi32>
          %36 = tpu.iota {dimensions = array<i32: 1>} : vector<1x128xi32>
          %37 = vector.broadcast %27 : vector<1x1xf32> to vector<8x1xf32>
          %38 = arith.cmpf oeq, %25, %37 : vector<8x1xf32>
          %c8_i32 = arith.constant 8 : i32
          %39 = vector.broadcast %c8_i32 : i32 to vector<8x1xi32>
          %40 = arith.select %38, %35, %39 : vector<8x1xi1>, vector<8x1xi32>
          %41 = vector.shape_cast %40 : vector<8x1xi32> to vector<1x8x1xi32>
          %cst_25 = arith.constant dense<2147483647> : vector<1xi32>
          %42 = vector.multi_reduction <minsi>, %41, %cst_25 [1, 2] : vector<1x8x1xi32> to vector<1xi32>
          %43 = vector.shape_cast %42 : vector<1xi32> to vector<1x1x1xi32>
          %44 = vector.extract %43[0, 0, 0] : i32 from vector<1x1x1xi32>
          %45 = arith.index_cast %44 : i32 to index
          %c0_26 = arith.constant 0 : index
          %46 = vector.load %arg4[%45, %c0_26] : memref<8x128xf32, #tpu.memory_space<vmem>>, vector<1x128xf32>
          %47 = vector.broadcast %27 : vector<1x1xf32> to vector<1x128xf32>
          %48 = arith.cmpf oeq, %46, %47 : vector<1x128xf32>
          %c128_i32 = arith.constant 128 : i32
          %49 = vector.broadcast %c128_i32 : i32 to vector<1x128xi32>
          %50 = arith.select %48, %36, %49 : vector<1x128xi1>, vector<1x128xi32>
          %51 = vector.shape_cast %50 : vector<1x128xi32> to vector<1x1x128xi32>
          %cst_27 = arith.constant dense<2147483647> : vector<1xi32>
          %52 = vector.multi_reduction <minsi>, %51, %cst_27 [1, 2] : vector<1x1x128xi32> to vector<1xi32>
          %53 = vector.shape_cast %52 : vector<1xi32> to vector<1x1x1xi32>
          %54 = vector.extract %53[0, 0, 0] : i32 from vector<1x1x1xi32>
          %c128_i32_28 = arith.constant 128 : i32
          %55 = arith.muli %44, %c128_i32_28 : i32
          %56 = arith.addi %55, %54 : i32
          %c0_i32_29 = arith.constant 0 : i32
          %57 = tpu.memref_slice %arg2[%arg0, %56, %c0_i32_29] : memref<2x1024x128xf32, #tpu.memory_space<any>> -> memref<1x1x128xf32, #tpu.memory_space<any>>
          %58 = tpu.memref_squeeze %57 : memref<1x1x128xf32, #tpu.memory_space<any>> -> memref<1x128xf32, #tpu.memory_space<any>>
          tpu.enqueue_dma source(%58 : memref<1x128xf32, #tpu.memory_space<any>>) target(%arg5 : memref<1x128xf32, #tpu.memory_space<vmem>>) target_semaphore(%arg7 : memref<!tpu.dma_semaphore, #tpu.memory_space<semaphore_mem>>)
          %59 = vector.broadcast %54 : i32 to vector<1x128xi32>
          %60 = arith.cmpi eq, %36, %59 : vector<1x128xi32>
          %c0_i32_30 = arith.constant 0 : i32
          %61 = arith.addi %c0_i32_30, %44 : i32
          %c0_31 = arith.constant 0 : index
          %62 = arith.index_cast %61 : i32 to index
          %c0_32 = arith.constant 0 : index
          %63 = vector.load %arg1[%c0_31, %62, %c0_32] : memref<1x48x128xf32, #tpu.memory_space<vmem>>, vector<1x1x128xf32>
          %64 = vector.shape_cast %63 : vector<1x1x128xf32> to vector<1x128xf32>
          %cst_33 = arith.constant 0.000000e+00 : f32
          %65 = vector.broadcast %cst_33 : f32 to vector<1x128xf32>
          %66 = arith.select %60, %64, %65 : vector<1x128xi1>, vector<1x128xf32>
          %cst_34 = arith.constant dense<0.000000e+00> : vector<1xf32>
          %67 = vector.multi_reduction <add>, %66, %cst_34 [1] : vector<1x128xf32> to vector<1xf32>
          %68 = vector.shape_cast %67 : vector<1xf32> to vector<1x1xf32>
          %c8_i32_35 = arith.constant 8 : i32
          %69 = arith.addi %c8_i32_35, %44 : i32
          %c0_36 = arith.constant 0 : index
          %70 = arith.index_cast %69 : i32 to index
          %c0_37 = arith.constant 0 : index
          %71 = vector.load %arg1[%c0_36, %70, %c0_37] : memref<1x48x128xf32, #tpu.memory_space<vmem>>, vector<1x1x128xf32>
          %72 = vector.shape_cast %71 : vector<1x1x128xf32> to vector<1x128xf32>
          %cst_38 = arith.constant 0.000000e+00 : f32
          %73 = vector.broadcast %cst_38 : f32 to vector<1x128xf32>
          %74 = arith.select %60, %72, %73 : vector<1x128xi1>, vector<1x128xf32>
          %cst_39 = arith.constant dense<0.000000e+00> : vector<1xf32>
          %75 = vector.multi_reduction <add>, %74, %cst_39 [1] : vector<1x128xf32> to vector<1xf32>
          %76 = vector.shape_cast %75 : vector<1xf32> to vector<1x1xf32>
          %c16_i32 = arith.constant 16 : i32
          %77 = arith.addi %c16_i32, %44 : i32
          %c0_40 = arith.constant 0 : index
          %78 = arith.index_cast %77 : i32 to index
          %c0_41 = arith.constant 0 : index
          %79 = vector.load %arg1[%c0_40, %78, %c0_41] : memref<1x48x128xf32, #tpu.memory_space<vmem>>, vector<1x1x128xf32>
          %80 = vector.shape_cast %79 : vector<1x1x128xf32> to vector<1x128xf32>
          %cst_42 = arith.constant 0.000000e+00 : f32
          %81 = vector.broadcast %cst_42 : f32 to vector<1x128xf32>
          %82 = arith.select %60, %80, %81 : vector<1x128xi1>, vector<1x128xf32>
          %cst_43 = arith.constant dense<0.000000e+00> : vector<1xf32>
          %83 = vector.multi_reduction <add>, %82, %cst_43 [1] : vector<1x128xf32> to vector<1xf32>
          %84 = vector.shape_cast %83 : vector<1xf32> to vector<1x1xf32>
          %c24_i32 = arith.constant 24 : i32
          %85 = arith.addi %c24_i32, %44 : i32
          %c0_44 = arith.constant 0 : index
          %86 = arith.index_cast %85 : i32 to index
          %c0_45 = arith.constant 0 : index
          %87 = vector.load %arg1[%c0_44, %86, %c0_45] : memref<1x48x128xf32, #tpu.memory_space<vmem>>, vector<1x1x128xf32>
          %88 = vector.shape_cast %87 : vector<1x1x128xf32> to vector<1x128xf32>
          %cst_46 = arith.constant 0.000000e+00 : f32
          %89 = vector.broadcast %cst_46 : f32 to vector<1x128xf32>
          %90 = arith.select %60, %88, %89 : vector<1x128xi1>, vector<1x128xf32>
          %cst_47 = arith.constant dense<0.000000e+00> : vector<1xf32>
          %91 = vector.multi_reduction <add>, %90, %cst_47 [1] : vector<1x128xf32> to vector<1xf32>
          %92 = vector.shape_cast %91 : vector<1xf32> to vector<1x1xf32>
          %c40_i32 = arith.constant 40 : i32
          %93 = arith.addi %c40_i32, %44 : i32
          %c0_48 = arith.constant 0 : index
          %94 = arith.index_cast %93 : i32 to index
          %c0_49 = arith.constant 0 : index
          %95 = vector.load %arg1[%c0_48, %94, %c0_49] : memref<1x48x128xf32, #tpu.memory_space<vmem>>, vector<1x1x128xf32>
          %96 = vector.shape_cast %95 : vector<1x1x128xf32> to vector<1x128xf32>
          %cst_50 = arith.constant 0.000000e+00 : f32
          %97 = vector.broadcast %cst_50 : f32 to vector<1x128xf32>
          %98 = arith.select %60, %96, %97 : vector<1x128xi1>, vector<1x128xf32>
          %cst_51 = arith.constant dense<0.000000e+00> : vector<1xf32>
          %99 = vector.multi_reduction <add>, %98, %cst_51 [1] : vector<1x128xf32> to vector<1xf32>
          %100 = vector.shape_cast %99 : vector<1xf32> to vector<1x1xf32>
          %c0_52 = arith.constant 0 : index
          %c0_53 = arith.constant 0 : index
          %c0_54 = arith.constant 0 : index
          %101 = vector.load %arg1[%c0_52, %c0_53, %c0_54] : memref<1x48x128xf32, #tpu.memory_space<vmem>>, vector<1x8x128xf32>
          %102 = vector.shape_cast %101 : vector<1x8x128xf32> to vector<8x128xf32>
          %c0_55 = arith.constant 0 : index
          %c8 = arith.constant 8 : index
          %c0_56 = arith.constant 0 : index
          %103 = vector.load %arg1[%c0_55, %c8, %c0_56] : memref<1x48x128xf32, #tpu.memory_space<vmem>>, vector<1x8x128xf32>
          %104 = vector.shape_cast %103 : vector<1x8x128xf32> to vector<8x128xf32>
          %c0_57 = arith.constant 0 : index
          %c16 = arith.constant 16 : index
          %c0_58 = arith.constant 0 : index
          %105 = vector.load %arg1[%c0_57, %c16, %c0_58] : memref<1x48x128xf32, #tpu.memory_space<vmem>>, vector<1x8x128xf32>
          %106 = vector.shape_cast %105 : vector<1x8x128xf32> to vector<8x128xf32>
          %c0_59 = arith.constant 0 : index
          %c24 = arith.constant 24 : index
          %c0_60 = arith.constant 0 : index
          %107 = vector.load %arg1[%c0_59, %c24, %c0_60] : memref<1x48x128xf32, #tpu.memory_space<vmem>>, vector<1x8x128xf32>
          %108 = vector.shape_cast %107 : vector<1x8x128xf32> to vector<8x128xf32>
          %c0_61 = arith.constant 0 : index
          %c40 = arith.constant 40 : index
          %c0_62 = arith.constant 0 : index
          %109 = vector.load %arg1[%c0_61, %c40, %c0_62] : memref<1x48x128xf32, #tpu.memory_space<vmem>>, vector<1x8x128xf32>
          %110 = vector.shape_cast %109 : vector<1x8x128xf32> to vector<8x128xf32>
          %111 = vector.broadcast %68 : vector<1x1xf32> to vector<8x128xf32>
          %112 = arith.maximumf %102, %111 : vector<8x128xf32>
          %113 = vector.broadcast %76 : vector<1x1xf32> to vector<8x128xf32>
          %114 = arith.maximumf %104, %113 : vector<8x128xf32>
          %115 = vector.broadcast %84 : vector<1x1xf32> to vector<8x128xf32>
          %116 = arith.minimumf %106, %115 : vector<8x128xf32>
          %117 = vector.broadcast %92 : vector<1x1xf32> to vector<8x128xf32>
          %118 = arith.minimumf %108, %117 : vector<8x128xf32>
          %119 = arith.subf %116, %112 : vector<8x128xf32>
          %cst_63 = arith.constant 0.000000e+00 : f32
          %120 = vector.broadcast %cst_63 : f32 to vector<8x128xf32>
          %121 = arith.maximumf %119, %120 : vector<8x128xf32>
          %122 = arith.subf %118, %114 : vector<8x128xf32>
          %cst_64 = arith.constant 0.000000e+00 : f32
          %123 = vector.broadcast %cst_64 : f32 to vector<8x128xf32>
          %124 = arith.maximumf %122, %123 : vector<8x128xf32>
          %125 = arith.mulf %121, %124 : vector<8x128xf32>
          %126 = vector.broadcast %100 : vector<1x1xf32> to vector<8x128xf32>
          %127 = arith.addf %110, %126 : vector<8x128xf32>
          %128 = arith.subf %127, %125 : vector<8x128xf32>
          %129 = vector.broadcast %44 : i32 to vector<8x1xi32>
          %130 = arith.cmpi eq, %35, %129 : vector<8x1xi32>
          %131 = vector.broadcast %54 : i32 to vector<1x128xi32>
          %132 = arith.cmpi eq, %36, %131 : vector<1x128xi32>
          %133 = vector.broadcast %130 : vector<8x1xi1> to vector<8x128xi1>
          %134 = vector.broadcast %132 : vector<1x128xi1> to vector<8x128xi1>
          %135 = arith.andi %133, %134 : vector<8x128xi1>
          %cst_65 = arith.constant 5.000000e-01 : f32
          %136 = vector.broadcast %cst_65 : f32 to vector<8x128xf32>
          %137 = arith.mulf %136, %128 : vector<8x128xf32>
          %138 = arith.cmpf ogt, %125, %137 : vector<8x128xf32>
          %139 = arith.ori %138, %135 : vector<8x128xi1>
          %cst_66 = arith.constant 0xFF800000 : f32
          %140 = vector.broadcast %cst_66 : f32 to vector<8x128xf32>
          %141 = arith.select %139, %140, %23 : vector<8x128xi1>, vector<8x128xf32>
          %c0_67 = arith.constant 0 : index
          %c0_68 = arith.constant 0 : index
          %142 = vector.load %arg4[%c0_67, %c0_68] : memref<8x128xf32, #tpu.memory_space<vmem>>, vector<8x128xf32>
          tpu.vector_store %arg4[%c0_67, %c0_68], %141 {strides = array<i32>} : memref<8x128xf32, #tpu.memory_space<vmem>>, vector<8x128xf32>,
          %c1_i32_69 = arith.constant 1 : i32
          %143 = arith.addi %18, %c1_i32_69 : i32
          %c0_70 = arith.constant 0 : index
          %144 = memref.load %arg6[%c0_70] : memref<1xi32, #tpu.memory_space<smem>>
          memref.store %143, %arg6[%c0_70] : memref<1xi32, #tpu.memory_space<smem>>
          %c0_i32_71 = arith.constant 0 : i32
          %145 = tpu.memref_slice %arg2[%arg0, %56, %c0_i32_71] : memref<2x1024x128xf32, #tpu.memory_space<any>> -> memref<1x1x128xf32, #tpu.memory_space<any>>
          %146 = tpu.memref_squeeze %145 : memref<1x1x128xf32, #tpu.memory_space<any>> -> memref<1x128xf32, #tpu.memory_space<any>>
          tpu.wait_dma2 semaphore(%arg7 : memref<!tpu.dma_semaphore, #tpu.memory_space<semaphore_mem>>) src(%146 : memref<1x128xf32, #tpu.memory_space<any>>) dst(%arg5 : memref<1x128xf32, #tpu.memory_space<vmem>>)
          %c0_72 = arith.constant 0 : index
          %c0_73 = arith.constant 0 : index
          %147 = vector.load %arg5[%c0_72, %c0_73] : memref<1x128xf32, #tpu.memory_space<vmem>>, vector<1x128xf32>
          %c0_74 = arith.constant 0 : index
          %148 = arith.index_cast %18 : i32 to index
          %c0_75 = arith.constant 0 : index
          %149 = vector.load %arg3[%c0_74, %148, %c0_75] : memref<1x101x128xf32, #tpu.memory_space<vmem>>, vector<1x1x128xf32>
          %150 = vector.shape_cast %149 : vector<1x1x128xf32> to vector<1x128xf32>
          %151 = vector.shape_cast %147 : vector<1x128xf32> to vector<1x1x128xf32>
          tpu.vector_store %arg3[%c0_74, %148, %c0_75], %151 {strides = array<i32>} : memref<1x101x128xf32, #tpu.memory_space<vmem>>, vector<1x1x128xf32>,
        } else {
        }
      } else {
      }
    }
    %c100_i32_10 = arith.constant 100 : i32
    %c0_11 = arith.constant 0 : index
    %11 = memref.load %arg6[%c0_11] : memref<1xi32, #tpu.memory_space<smem>>
    %12 = arith.sitofp %11 : i32 to f32
    %13 = vector.broadcast %12 : f32 to vector<1x128xf32>
    %c0_12 = arith.constant 0 : index
    %c100 = arith.constant 100 : index
    %c0_13 = arith.constant 0 : index
    %14 = vector.load %arg3[%c0_12, %c100, %c0_13] : memref<1x101x128xf32, #tpu.memory_space<vmem>>, vector<1x1x128xf32>
    %15 = vector.shape_cast %14 : vector<1x1x128xf32> to vector<1x128xf32>
    %16 = vector.shape_cast %13 : vector<1x128xf32> to vector<1x1x128xf32>
    tpu.vector_store %arg3[%c0_12, %c100, %c0_13], %16 {strides = array<i32>} : memref<1x101x128xf32, #tpu.memory_space<vmem>>, vector<1x1x128xf32>,
    return
  }
  func.func @transform_0(%arg0: i32) -> (i32, i32, i32) {
    %c0_i32 = arith.constant 0 : i32
    %c0_i32_0 = arith.constant 0 : i32
    %c0_i32_1 = arith.constant 0 : i32
    return %arg0, %c0_i32, %c0_i32_0 : i32, i32, i32
  }
  func.func @transform_2(%arg0: i32) -> (i32, i32, i32) {
    %c0_i32 = arith.constant 0 : i32
    %c0_i32_0 = arith.constant 0 : i32
    %c0_i32_1 = arith.constant 0 : i32
    return %arg0, %c0_i32, %c0_i32_0 : i32, i32, i32
  }
}

</mosaic_0001>

<bundles_post_ra>
// kernel: tpu_custom_call.1
= control target key start
LH: loop header
LB: loop body
LE: loop exit
PB: predicated region body
PF: predicated region fallthrough
CT: control target
= control target key end

     0   :  { %7 = vsyncpa [#allocation7], 0  ;;  %s835_s0 = inlined_call_operand.hbm [shape: f32[2,48,128], index: 0, kind: input, shape index: {}]   ;;  %s836_s1 = inlined_call_operand.hbm [shape: f32[2,1024,128], index: 1, kind: input, shape index: {}]   ;;  %s837_s2 = inlined_call_operand.vmem [shape: f32[2,101,128], index: 2, kind: output, shape index: {}]  }
   0x1   :  { %9 = vsyncpa [#allocation7 + $0x1], 0  ;;  %s636_s9 = smov 0   ;;  %s638_s10 = smov 0  }
   0x2   :  { %s640_s11 = smov 0   ;;  %s642_s12 = smov 0  }
   0x3 LB: > { %s655_s13 = sadd.s32 4294967295, %s609_s12   ;;  %s658_s14 = sadd.s32 1, %s609_s12   ;;  %s609_s12 = sphi %s642_s12, %s846_s12   ;;  %s605_s11 = sphi %s640_s11, %s845_s11   ;;  %s601_s10 = sphi %s638_s10, %s844_s10   ;;  %s597_s9 = sphi %s636_s9, %s843_s9  }
   0x4   : > { %s19_s15 = ssub.s32 %s609_s12, %s658_s14  ;;  %s22_s16 = sadd.s32 1, %s605_s11 }
   0x5   : > { %p20_p0 = scmp.eq.s32.totalorder %s19_s15, 0  ;;  %p29_p1 = scmp.ne.s32.totalorder %s605_s11, %s601_s10 }
   0x6   : > { %p30_p2 = scmp.eq.s32.totalorder %s609_s12, 0  ;;  %p35_p3 = scmp.ne.s32.totalorder %s601_s10, %s597_s9 }
   0x7   : > { %s668_s17 = scalar_select %p20_p0, %s605_s11, %s22_s16  }
   0x8   : > { %p31_p4 = por %p30_p2, %p29_p1  ;;  %p36_p5 = scmp.eq.s32.totalorder %s655_s13, 0 }
   0x9   : > { %p469_p6 = scmp.lt.s32.totalorder %s609_s12, 2  ;;  %s85_s19 = sand.u32 1, %s605_s11  }
   0xa   : > { %p672_p7 = por %p36_p5, %p35_p3  ;;  %s453_s20 = smul.u32 48, %s85_s19 }
   0xb   : > { %s454_s21 = smul.u32 768, %s609_s12  ;;  %p678_p8 = pnand %p469_p6, %p31_p4 }
   0xc   : > { %s89_s26 = scalar_lea.vmem [#allocation6], %s453_s20  ;;  %s690_s28 = scalar_lea.sflag [#allocation7], %s85_s19 }
   0xd   : > { %s685_s25 = scalar_lea.hbm %s835_s0, %s454_s21  ;;  %s96_s27 = sshll.u32 %s89_s26, 4  ;;  %s687_s27 = int_to_ptr.vmem [resolvable:$true] %s96_s27 }
   0xe   : > { %s515_s29 = scalar_lea.hbm %s685_s25, 768  ;;  %p517_p11 = pneg %p678_p8 }
   0xf   : > { %p516_p10 = scmp.ne.s32.totalorder %s685_s25, %s515_s29  ;;  %s520_s4 = scalar_lea.hbm %s835_s0, 1536 }
  0x10   : > { %p521_p0 = scmp.lt.u32.totalorder %s685_s25, %s835_s0  ;;  %p522_p1 = scmp.lt.u32.totalorder %s520_s4, %s515_s29 }
  0x11   : > { %p518_p12 = pnand %p517_p11, %p516_p10  ;;  %p524_p3 = scmp.lt.u32.totalorder %s515_s29, %s685_s25 }
  0x12   : > { %p523_p2 = por %p522_p1, %p521_p0 }
  0x13   : > { %p519_p13 = pneg %p518_p12 }
  0x14   : > { %p525_p4 = por %p524_p3, %p523_p2 }
  0x16   : > { %p526_p5 = pnand %p525_p4, %p519_p13 }
  0x18   : > { %529 = shalt.err (!%p526_p5)
}
  0x19   : > { %s530_s7 = scalar_lea.vmem %s687_s27, 768  ;;  %s615_s8 = smov [#allocation6]  }
  0x1a   : > { %p531_p6 = scmp.ne.s32.totalorder %s687_s27, %s530_s7  ;;  %s535_s9 = sshll.u32 %s615_s8, 4  ;;  %s536_s9 = int_to_ptr.vmem [resolvable:$false] %s535_s9 }
  0x1b   : > { %s537_s15 = scalar_lea.vmem %s536_s9, 1536  ;;  %p538_p9 = scmp.lt.s32.totalorder %s687_s27, %s536_s9 }
  0x1c   : > { %p533_p10 = pnand %p531_p6, %p517_p11  ;;  %p539_p0 = scmp.lt.s32.totalorder %s537_s15, %s530_s7 }
  0x1e   : > { %p534_p12 = pneg %p533_p10  ;;  %p540_p1 = por %p539_p0, %p538_p9 }
  0x20   : > { %p541_p2 = pnand %p540_p1, %p534_p12 }
  0x22   : > { %544 = shalt.err (!%p541_p2)
}
  0x23   : > { %s616_s16 = smov 128   ;;  %s617_s19 = smov 8  }
  0x24   : > { %468 = dma.hbm_to_vmem [thread:$0]  (!%p678_p8), %s685_s25, 768, %s687_s27, %s690_s28, %s616_s16, %s616_s16, %s617_s19  }
  0x25   : > { %p104_p11 = scmp.lt.s32.totalorder %s609_s12, 3  ;;  %p840_p13 = scmp.ge.s32.totalorder %s609_s12, 1 }
  0x27   : > { %p105_p3 = pnand %p840_p13, %p104_p11 }
  0x28   : > { %s110_s20 = sand.u32 (!%p105_p3), 1, %s601_s10  }
  0x29   : > { %108 = sbr.rel (%p105_p3) target bundleno = 907 (0x38b), region = 24  ;;  %s111_s23 = scalar_lea.sflag (!%p105_p3), [#allocation7], %s110_s20 }
  0x2a   : > { %s455_s21 = smul.u32 (!%p105_p3), 48, %s110_s20 }
  0x2c   : > { %s722_s24 = scalar_lea.vmem (!%p105_p3), [#allocation6], %s455_s21 }
  0x30   : > { %590 = dma.done.wait (%p672_p7), %s111_s23, 768  }
  0x31   : > { %592 = vsyncadd (%p672_p7), %s111_s23, 4294966528  ;;  %p133_p8 = scmp.lt.s32.totalorder %s655_s13, 1  ;;  %s618_s22 = smov 0   ;;  %v138_v0 = vld [vmem:[%s722_s24 + $0x20] sm:$0xff]  ;;  %v619_v1 = vmov 0.0  }
  0x32   : > { %156 = sst [smem:[#allocation4]] %s618_s22  ;;  %vm139_vm0 = vcmp.ge.f32.partialorder %v138_v0, 0.5  ;;  %s749_s18 = smov 0  }
  0x33   : > { %s134_s12 = scalar_select %p133_p8, %s655_s13, 1  ;;  %v140_v2 = vsel %vm139_vm0, %v138_v0, -inf }
  0x34   : > { %141 = vst [vmem:[#allocation2] sm:$0xff] %v140_v2 }
  0x35   : > { %s456_s25 = smul.u32 104, %s134_s12 }
  0x37   : > { %s733_s28 = scalar_lea.vmem %s837_s2, %s456_s25 }
  0x38   : > { %142 = vst [vmem:[%s733_s28] sm:$0xff] %v619_v1  ;;  %143 = vst [vmem:[%s733_s28 + $0x8] sm:$0xff] %v619_v1 }
  0x39   : > { %144 = vst [vmem:[%s733_s28 + $0x10] sm:$0xff] %v619_v1  ;;  %145 = vst [vmem:[%s733_s28 + $0x18] sm:$0xff] %v619_v1 }
  0x3a   : > { %146 = vst [vmem:[%s733_s28 + $0x20] sm:$0xff] %v619_v1  ;;  %147 = vst [vmem:[%s733_s28 + $0x28] sm:$0xff] %v619_v1 }
  0x3b   : > { %148 = vst [vmem:[%s733_s28 + $0x30] sm:$0xff] %v619_v1  ;;  %149 = vst [vmem:[%s733_s28 + $0x38] sm:$0xff] %v619_v1 }
  0x3c   : > { %150 = vst [vmem:[%s733_s28 + $0x40] sm:$0xff] %v619_v1  ;;  %151 = vst [vmem:[%s733_s28 + $0x48] sm:$0xff] %v619_v1 }
  0x3d   : > { %152 = vst [vmem:[%s733_s28 + $0x50] sm:$0xff] %v619_v1  ;;  %153 = vst [vmem:[%s733_s28 + $0x58] sm:$0xff] %v619_v1 }
  0x3e   : > { %154 = vst [vmem:[%s733_s28 + $0x60] sm:$0x1f] %v619_v1 }
  0x3f LB: >> { %s163_s29 = sld [smem:[#allocation4]]  ;;  %s613_s18 = sphi %s749_s18, %s162_s18  }
  0x45   : >> { %p442_p7 = scmp.ne.s32.totalorder %s163_s29, %s613_s18 }
  0x46   : >> { %v755_v3 = vld [vmem:[#allocation2] sm:$0xff] (!%p442_p7) }
  0x47   : >> { %167 = sbr.rel (%p442_p7) target bundleno = 895 (0x37f), region = 39  ;;  %169 = vmax.xlane.f32.xlu0 (!%p442_p7), %v755_v3 }
  0xd4   : >> { %v170_v4 = vpop.xlane.xlu0 %169 }
  0xd5   : >> { %v171_v5 = vrot.slane %v170_v4, 4 }
  0xd7   : >> { %v172_v6 = vmax.f32 %v170_v4, %v171_v5 }
  0xd9   : >> { %v173_v7 = vrot.slane %v172_v6, 2 }
  0xdb   : >> { %v174_v8 = vmax.f32 %v172_v6, %v173_v7 }
  0xdd   : >> { %v175_v9 = vrot.slane %v174_v8, 1 }
  0xdf   : >> { %v176_v10 = vmax.f32 %v174_v8, %v175_v9 }
  0xe1   : >> { %457 = vpush %v176_v10 }
 0x112   : >> { %s458_s30 = spop %457 }
 0x113   : >> { %p178_p9 = scmp.ge.f32.partialorder %s458_s30, 0.5 }
 0x114   : >> { %v182_v11 = vlaneseq (%p178_p9)  ;;  %vm186_vm1 = vcmp.eq.f32.partialorder (%p178_p9), %v170_v4, %v176_v10  ;;  %vm202_vm5 = vcmask (%p178_p9), 1040384   ;;  %s444_s6 = sshll.u32 (%p178_p9), %s655_s13, 10  ;;  %s620_s7 = smov (%p178_p9), [#allocation3]  }
 0x115   : >> { %181 = sbr.rel (!%p178_p9) target bundleno = 895 (0x37f), region = 43  ;;  %s241_s8 = sshll.u32 (%p178_p9), %s620_s7, 4  ;;  %s242_s8 = int_to_ptr.vmem [resolvable:$true] %s241_s8 }
 0x116   : >> { %v758_v12 = vshrl.u32 (%p178_p9), %v182_v11, 7  ;;  %v185_v20 = vand.u32 (%p178_p9), 127, %v182_v11  ;;  %s547_s27 = scalar_lea.hbm (%p178_p9), %s836_s1, 32768 }
 0x118   : >> { %v187_v13 = vsel (%p178_p9), %vm186_vm1, %v758_v12, 8 }
 0x119   : >> { %v188_v14 = vrot.slane (%p178_p9), %v187_v13, 4 }
 0x11b   : >> { %vm189_vm2 = vcmp.lt.s32.totalorder (%p178_p9), %v187_v13, %v188_v14 }
 0x11c   : >> { %v190_v15 = vsel %vm189_vm2, %v187_v13, %v188_v14 }
 0x11d   : >> { %v191_v16 = vrot.slane %v190_v15, 2 }
 0x11f   : >> { %vm192_vm3 = vcmp.lt.s32.totalorder %v190_v15, %v191_v16 }
 0x120   : >> { %v193_v17 = vsel %vm192_vm3, %v190_v15, %v191_v16 }
 0x121   : >> { %v194_v18 = vrot.slane %v193_v17, 1 }
 0x123   : >> { %vm195_vm4 = vcmp.lt.s32.totalorder %v193_v17, %v194_v18 }
 0x124   : >> { %v196_v19 = vsel %vm195_vm4, %v193_v17, %v194_v18 }
 0x125   : >> { %459 = vpush %v196_v19 }
 0x156   : >> { %s761_s3 = spop %459 }
 0x157   : >> { %s198_s4 = scalar_lea.vmem [#allocation2], %s761_s3  ;;  %s767_s5 = scalar_lea.vmem %s722_s24, %s761_s3 [#allocation6] }
 0x158   : >> { %v199_v21 = vld [vmem:[%s198_s4] sm:$0x1]  ;;  %s443_s15 = sshll.u32 %s761_s3, 7  ;;  %v447_v43 = vld [vmem:[%s767_s5 + $0x10] sm:$0x1] }
 0x159   : >> { %vm200_vm6 = vcmp.eq.f32.partialorder %v199_v21, %v176_v10  ;;  %v248_v44 = vld [vmem:[%s767_s5] sm:$0x1]  ;;  %v449_v49 = vld [vmem:[%s767_s5 + $0x28] sm:$0x1] }
 0x15a   : >> { %v201_v22 = vsel %vm200_vm6, %v185_v20, 128  ;;  %v446_v50 = vld [vmem:[%s767_s5 + $0x8] sm:$0x1] }
 0x15b   : >> { %v203_v23 = vsel %vm202_vm5, %v201_v22, 2147483647 }
 0x15c   : >> { %v205_v24 = vshra.s32 %v203_v23, 16  ;;  %v204_v26 = vand.u32 65535, %v203_v23 }
 0x15e   : >> { %v207_v25 = vcvt.s32.f32 %v205_v24  ;;  %v206_v28 = vcvt.s32.f32 %v204_v26 }
 0x160   : >> { %208 = vmin.xlane.f32.xlu0 %v207_v25 }
 0x1ed   : >> { %v209_v27 = vpop.xlane.xlu0 %208 }
 0x1ee   : >> { %vm210_vm7 = vcmp.eq.f32.partialorder %v207_v25, %v209_v27  ;;  %v215_v30 = vcvt.f32.s32 %v209_v27 }
 0x1ef   : >> { %v211_v29 = vsel %vm210_vm7, %v206_v28, inf }
 0x1f0   : >> { %212 = vmin.xlane.f32.xlu0 %v211_v29  ;;  %v216_v32 = vshll.u32 %v215_v30, 16 }
 0x27d   : >> { %v213_v31 = vpop.xlane.xlu0 %212 }
 0x27e   : >> { %v214_v33 = vcvt.f32.s32 %v213_v31 }
 0x280   : >> { %v217_v34 = vadd.s32 %v216_v32, %v214_v33 }
 0x282   : >> { %v218_v35 = vrot.slane %v217_v34, 4 }
 0x284   : >> { %vm219_vm8 = vcmp.lt.s32.totalorder %v217_v34, %v218_v35 }
 0x285   : >> { %v220_v36 = vsel %vm219_vm8, %v217_v34, %v218_v35 }
 0x286   : >> { %v221_v37 = vrot.slane %v220_v36, 2 }
 0x288   : >> { %vm222_vm9 = vcmp.lt.s32.totalorder %v220_v36, %v221_v37 }
 0x289   : >> { %v223_v38 = vsel %vm222_vm9, %v220_v36, %v221_v37 }
 0x28a   : >> { %v224_v39 = vrot.slane %v223_v38, 1 }
 0x28c   : >> { %vm225_vm10 = vcmp.lt.s32.totalorder %v223_v38, %v224_v39 }
 0x28d   : >> { %v226_v40 = vsel %vm225_vm10, %v223_v38, %v224_v39 }
 0x28e   : >> { %461 = vpush %v226_v40 }
 0x2bf   : >> { %s462_s9 = spop %461 }
 0x2c0   : >> { %s229_s16 = sadd.s32 %s462_s9, %s443_s15  ;;  %v245_v41 = vstv %s462_s9 }
 0x2c1   : >> { %vm771_vm11 = vcmp.eq.s32.totalorder %v185_v20, %v245_v41  ;;  %s231_s19 = sadd.s32 %s444_s6, %s229_s16 }
 0x2c2   : >> { %v263_v45 = vsel %vm771_vm11, %v447_v43, 0.0  ;;  %v249_v46 = vsel %vm771_vm11, %v248_v44, 0.0  ;;  %s445_s20 = sshll.u32 %s231_s19, 4 }
 0x2c3   : >> { %v264_v47 = vsel %vm202_vm5, %v263_v45, 0.0  ;;  %v250_v48 = vsel %vm202_vm5, %v249_v46, 0.0  ;;  %s233_s22 = scalar_lea.hbm %s836_s1, %s445_s20 }
 0x2c4   : >> { %265 = vadd.xlane.f32.xlu0 %v264_v47  ;;  %251 = vadd.xlane.f32.xlu1 %v250_v48  ;;  %s545_s12 = scalar_lea.hbm %s233_s22, 16  ;;  %p548_p5 = scmp.lt.u32.totalorder %s233_s22, %s836_s1 }
 0x2c5   : >> { %p546_p4 = scmp.ne.s32.totalorder %s233_s22, %s545_s12  ;;  %p549_p6 = scmp.lt.u32.totalorder %s547_s27, %s545_s12 }
 0x2c6   : >> { %p551_p12 = scmp.lt.u32.totalorder %s545_s12, %s233_s22 }
 0x2c7   : >> { %p550_p10 = por %p549_p6, %p548_p5 }
 0x2c9   : >> { %p552_p0 = por %p551_p12, %p550_p10 }
 0x2cb   : >> { %p553_p1 = pnand %p552_p0, %p546_p4 }
 0x2cd   : >> { %556 = shalt.err (!%p553_p1)  }
 0x2ce   : >> { %s557_s4 = scalar_lea.vmem %s242_s8, 16  ;;  %p562_p11 = scmp.lt.s32.totalorder %s242_s8, %s242_s8 }
 0x2cf   : >> { %p558_p2 = scmp.ne.s32.totalorder %s242_s8, %s557_s4  ;;  %p563_p13 = scmp.lt.s32.totalorder %s557_s4, %s557_s4 }
 0x2d1   : >> { %p564_p3 = por %p563_p13, %p562_p11 }
 0x2d3   : >> { %p565_p8 = pnand %p564_p3, %p558_p2 }
 0x2d5   : >> { %568 = shalt.err (!%p565_p8)  }
 0x2d6   : >> { %244 = dma.hbm_to_vmem [thread:$0]  %s233_s22, 16, %s242_s8, [#allocation5]  ;;  %v277_v51 = vsel %vm771_vm11, %v449_v49, 0.0  ;;  %v256_v52 = vsel %vm771_vm11, %v446_v50, 0.0  ;;  %v448_v55 = vld [vmem:[%s767_s5 + $0x18] sm:$0x1]  ;;  %v317_v22 = vstv %s761_s3 }
 0x2d7   : >> { %v278_v53 = vsel %vm202_vm5, %v277_v51, 0.0  ;;  %v257_v54 = vsel %vm202_vm5, %v256_v52, 0.0  ;;  %v270_v56 = vsel %vm771_vm11, %v448_v55, 0.0  ;;  %s329_s6 = sadd.s32 1, %s613_s18  ;;  %v288_v58 = vsub.s32 0, %v758_v12  ;;  %v283_v63 = vld [vmem:[%s722_s24 + $0x10] sm:$0xff] }
 0x2d8   : >> { %279 = vadd.xlane.f32.xlu0 %v278_v53  ;;  %258 = vadd.xlane.f32.xlu1 %v257_v54  ;;  %v271_v57 = vsel %vm202_vm5, %v270_v56, 0.0  ;;  %330 = sst [smem:[#allocation4]] %s329_s6  ;;  %v281_v0 = vld [vmem:[%s722_s24] sm:$0xff]  ;;  %v282_v6 = vld [vmem:[%s722_s24 + $0x8] sm:$0xff]  ;;  %v284_v7 = vld [vmem:[%s722_s24 + $0x18] sm:$0xff]  ;;  %vm318_vm12 = vcmp.eq.s32.totalorder %v758_v12, %v317_v22 }
 0x2d9   : >> { %v285_v17 = vld [vmem:[%s722_s24 + $0x28] sm:$0xff]  ;;  %vm323_vm13 = vmand %vm318_vm12, %vm771_vm11 }
 0x2dc   : >> { %272 = vadd.xlane.f32.xlu1 %v271_v57 }
 0x351   : >> { %v266_v59 = vpop.xlane.xlu0 %265  ;;  %v252_v60 = vpop.xlane.xlu1 %251 }
 0x352   : >> { %v299_v61 = vrot.slane %v266_v59, %v288_v58  ;;  %v289_v62 = vrot.slane %v252_v60, %v288_v58 }
 0x354   : >> { %v300_v2 = vmin.f32 %v283_v63, %v299_v61  ;;  %v290_v4 = vmax.f32 %v281_v0, %v289_v62 }
 0x356   : >> { %v306_v11 = vsub.f32 %v300_v2, %v290_v4 }
 0x358   : >> { %v307_v18 = vmax.f32 %v306_v11, 0.0 }
 0x365   : >> { %v259_v1 = vpop.xlane.xlu1 %258  ;;  %v280_v10 = vpop.xlane.xlu0 %279 }
 0x366   : >> { %v294_v5 = vrot.slane %v259_v1, %v288_v58  ;;  %v314_v15 = vrot.slane %v280_v10, %v288_v58 }
 0x368   : >> { %v295_v13 = vmax.f32 %v282_v6, %v294_v5  ;;  %v315_v20 = vadd.f32 %v314_v15, %v285_v17 }
 0x369   : >> { %v273_v8 = vpop.xlane.xlu1 %272 }
 0x36a   : >> { %v304_v9 = vrot.slane %v273_v8, %v288_v58 }
 0x36c   : >> { %v305_v14 = vmin.f32 %v284_v7, %v304_v9 }
 0x36e   : >> { %v308_v16 = vsub.f32 %v305_v14, %v295_v13 }
 0x370   : >> { %v309_v19 = vmax.f32 %v308_v16, 0.0 }
 0x372   : >> { %v310_v21 = vmul.f32 %v309_v19, %v307_v18 }
 0x374   : >> { %v316_v23 = vsub.f32 %v315_v20, %v310_v21 }
 0x376   : >> { %v324_v24 = vmul.f32 0.5, %v316_v23 }
 0x378   : >> { %vm325_vm14 = vcmp.gt.f32.partialorder %v310_v21, %v324_v24 }
 0x379   : >> { %vm326_vm15 = vmor %vm325_vm14, %vm323_vm13 }
 0x37a   : >> { %v327_v25 = vsel %vm326_vm15, -inf, %v755_v3 }
 0x37b   : >> { %328 = vst [vmem:[#allocation2] sm:$0xff] %v327_v25 }
 0x37c   : >> { %593 = dma.done.wait [#allocation5], 16 }
 0x37d   : >> { %594 = vsyncadd [#allocation5], 4294967280  ;;  %s335_s5 = scalar_lea.vmem %s733_s28, %s613_s18  ;;  %v334_v26 = vld [vmem:[#allocation3] sm:$0x1] }
 0x37e   : >> { %336 = vst [vmem:[%s335_s5] sm:$0x1] %v334_v26 }
 0x37f PF: >> { %s162_s18 = sadd.s32 1, %s613_s18  }
 0x380   : >> { %p159_p7 = scmp.ge.s32.totalorder %s162_s18, 100  }
 0x381   : > { %s337_s3 = sld [smem:[#allocation4]] (%p159_p7) }
 0x382   : > { %161 = sbr.rel (!%p159_p7) target bundleno = 63 (0x3f), region = 92 }
 0x387   : > { %s338_s7 = scvt.s32.f32 (%p159_p7), %s337_s3 }
 0x389   : > { %v339_v3 = vstv %s338_s7 }
 0x38a   : > { %340 = vst [vmem:[%s733_s28 + $0x64] sm:$0x1] %v339_v3 }
 0x38b PF: > { %p12_p9 = scmp.ge.s32.totalorder %s658_s14, 4   ;;  %s843_s9 = smov %s601_s10 }
 0x38c   : > { %s844_s10 = smov %s605_s11  ;;  %s845_s11 = smov %s668_s17 }
 0x38d   : > { %s846_s12 = smov %s658_s14  ;;  %14 = sbr.rel (!%p12_p9) target bundleno = 3 (0x3), region = 103 }
 0x394   :  { %362 = vsyncpa [#allocation7], 1 }
 0x395   :  { %364 = vsyncpa [#allocation7 + $0x1], 1 }
 0x396   :  { %365 = vsyncmov [#allocation5] }
 0x399   :  { %s366_s13 = vpop.sfrf %365 }
 0x39a   :  { %p452_p4 = scmp.ne.s32.totalorder %s366_s13, 0 }
 0x39c   :  { %370 = shalt.err (%p452_p4)  }

</bundles_post_ra>
